<compile_context>
chip_gen: v7x
topology: tpu7x:2x2x1
jax: 0.10.0
libtpu: 0.0.40
codegen_flags: <defaults>
</compile_context>

<pallas_src>
import functools

import jax
import jax.numpy as jnp
from jax.experimental import pallas as pl
from jax.experimental.pallas import tpu as pltpu


def _mha_kernel(img_ref, tab_ref, w_img_ref, b_img_ref, w_tab_ref, b_tab_ref,
                feat_img_ref, feat_tab_ref, score_ref, *,
                num_heads, image_dim, table_dim):
    """All heads in one invocation.

    Shapes (B = batch, Di = image dim, Dt = table dim, H = heads):
      img_ref   : (B, Di)        tab_ref   : (B, Dt)
      w_img_ref : (Di, H)        b_img_ref : (1, H)
      w_tab_ref : (Dt, H*Dt)     b_tab_ref : (1, H*Dt)
      feat_img_ref : (B, H*Di)   feat_tab_ref : (B, H*Dt)
      score_ref    : (B, H*Dt)
    """
    img = img_ref[...]                                   # (B, Di)
    tab = tab_ref[...]                                   # (B, Dt)

    # Image attention logits for all heads in one MXU push -> (B, H).
    img_logit = jnp.dot(img, w_img_ref[...],
                        preferred_element_type=jnp.float32) + b_img_ref[...]
    img_score = jax.nn.sigmoid(img_logit)                # (B, H)

    # Table attention logits for all heads in one MXU push -> (B, H*Dt).
    tab_logit = jnp.dot(tab, w_tab_ref[...],
                        preferred_element_type=jnp.float32) + b_tab_ref[...]

    # Static (trace-time) unroll over heads: per-head softmax + gating,
    # written with static lane-range stores into the flat output slabs.
    for h in range(num_heads):
        lo = h * table_dim
        logit_h = tab_logit[:, lo:lo + table_dim]        # (B, Dt)
        m = jnp.max(logit_h, axis=-1, keepdims=True)
        e = jnp.exp(logit_h - m)
        denom = jnp.sum(e, axis=-1, keepdims=True)
        inv = pl.reciprocal(denom, approx=False)         # EUP, exact
        score_h = e * inv                                # (B, Dt)

        score_ref[:, lo:lo + table_dim] = score_h
        feat_tab_ref[:, lo:lo + table_dim] = score_h * tab

        ilo = h * image_dim
        feat_img_ref[:, ilo:ilo + image_dim] = img_score[:, h:h + 1] * img


def multi_head_attention(image_feature, table_feature, w_img, b_img, w_tab,
                         b_tab):
    """Pallas wrapper. Takes PyTorch-native parameter layouts.

    Args:
      image_feature: (B, Di) f32
      table_feature: (B, Dt) f32
      w_img: (H, 1, Di) f32   per-head nn.Linear(Di, 1).weight  (out, in)
      b_img: (H, 1)    f32    per-head nn.Linear(Di, 1).bias
      w_tab: (H, Dt, Dt) f32  per-head nn.Linear(Dt, Dt).weight (out, in)
      b_tab: (H, Dt)   f32    per-head nn.Linear(Dt, Dt).bias
    Returns:
      multi_head_feature: (B, H*(Di+Dt)) f32
      scores: list of H arrays, each (B, Dt) f32
    """
    B, Di = image_feature.shape
    _, Dt = table_feature.shape
    H = w_img.shape[0]
    Dc = Di + Dt

    # Repack weights once (wrapper-side, cheap):
    #   image: (H,1,Di) -> (Di, H)   so  img @ W  gives per-head logits.
    w_img_all = jnp.transpose(w_img.reshape(H, Di), (1, 0))
    b_img_all = b_img.reshape(1, H)
    #   table: (H, out, in) -> (in, H*out)  so  tab @ W gives all heads at once.
    w_tab_all = jnp.transpose(w_tab, (2, 0, 1)).reshape(Dt, H * Dt)
    b_tab_all = b_tab.reshape(1, H * Dt)

    kernel = functools.partial(_mha_kernel, num_heads=H, image_dim=Di,
                               table_dim=Dt)

    vmem = lambda: pl.BlockSpec(memory_space=pltpu.MemorySpace.VMEM)

    feat_img, feat_tab, score = pl.pallas_call(
        kernel,
        out_shape=(
            jax.ShapeDtypeStruct((B, H * Di), jnp.float32),
            jax.ShapeDtypeStruct((B, H * Dt), jnp.float32),
            jax.ShapeDtypeStruct((B, H * Dt), jnp.float32),
        ),
        in_specs=[vmem() for _ in range(6)],
        out_specs=(vmem(), vmem(), vmem()),
    )(image_feature, table_feature, w_img_all, b_img_all, w_tab_all, b_tab_all)

    # torch.cat([img_h, tab_h], 1) per head, then cat over heads along dim=1:
    # (B, H, Di) ++ (B, H, Dt) -> (B, H, Dc) -> (B, H*Dc).  Reshapes are
    # contiguity-preserving; only the tiny concat does work (fused by XLA).
    multi_head_feature = jnp.concatenate(
        [feat_img.reshape(B, H, Di), feat_tab.reshape(B, H, Dt)],
        axis=-1).reshape(B, H * Dc)
    score_3d = score.reshape(B, H, Dt)
    score_list = [score_3d[:, h, :] for h in range(H)]
    return multi_head_feature, score_list


def _reference(image_feature, table_feature, w_img, b_img, w_tab, b_tab):
    """Pure-JAX reference mirroring the PyTorch forward."""
    H = w_img.shape[0]
    feats, scores = [], []
    for h in range(H):
        il = image_feature @ w_img[h].T + b_img[h]        # (B, 1)
        isc = jax.nn.sigmoid(il)
        tl = table_feature @ w_tab[h].T + b_tab[h]        # (B, Dt)
        tsc = jax.nn.softmax(tl, axis=1)
        feats.append(jnp.concatenate([isc * image_feature,
                                      tsc * table_feature], axis=1))
        scores.append(tsc)
    return jnp.concatenate(feats, axis=1), scores


if __name__ == "__main__":
    key = jax.random.PRNGKey(0)
    B, Di, Dt, H = 8, 32, 16, 2

    k1, k2, k3, k4, k5, k6 = jax.random.split(key, 6)
    image_feature = jax.random.normal(k1, (B, Di), dtype=jnp.float32)
    table_feature = jax.random.normal(k2, (B, Dt), dtype=jnp.float32)

    # PyTorch-native parameter layouts (nn.Linear weight is (out, in)).
    w_img = 0.1 * jax.random.normal(k3, (H, 1, Di), dtype=jnp.float32)
    b_img = 0.1 * jax.random.normal(k4, (H, 1), dtype=jnp.float32)
    w_tab = 0.1 * jax.random.normal(k5, (H, Dt, Dt), dtype=jnp.float32)
    b_tab = 0.1 * jax.random.normal(k6, (H, Dt), dtype=jnp.float32)

    out_feat, out_scores = multi_head_attention(
        image_feature, table_feature, w_img, b_img, w_tab, b_tab)
    jax.block_until_ready(out_feat)
    for s in out_scores:
        jax.block_until_ready(s)

    ref_feat, ref_scores = _reference(
        image_feature, table_feature, w_img, b_img, w_tab, b_tab)

    assert out_feat.shape == (B, H * (Di + Dt))
    assert len(out_scores) == H and out_scores[0].shape == (B, Dt)
    assert jnp.allclose(out_feat, ref_feat, atol=1e-5, rtol=1e-5)
    for h in range(H):
        assert jnp.allclose(out_scores[h], ref_scores[h], atol=1e-5, rtol=1e-5)

    print("KERNEL_OK")
</pallas_src>

<mosaic_0001>
module attributes {stable_mosaic.version = 11 : i64} {
  func.func @_mha_kernel(%arg0: memref<8x32xf32, #tpu.memory_space<vmem>>, %arg1: memref<8x16xf32, #tpu.memory_space<vmem>>, %arg2: memref<32x2xf32, #tpu.memory_space<vmem>>, %arg3: memref<1x2xf32, #tpu.memory_space<vmem>>, %arg4: memref<16x32xf32, #tpu.memory_space<vmem>>, %arg5: memref<1x32xf32, #tpu.memory_space<vmem>>, %arg6: memref<8x64xf32, #tpu.memory_space<vmem>>, %arg7: memref<8x32xf32, #tpu.memory_space<vmem>>, %arg8: memref<8x32xf32, #tpu.memory_space<vmem>>) attributes {dimension_semantics = [], scalar_prefetch = 0 : i64, scratch_operands = 0 : i64, tpu.core_type = #tpu.core_type<tc>} {
    %c0 = arith.constant 0 : index
    %c0_0 = arith.constant 0 : index
    %0 = vector.load %arg0[%c0, %c0_0] : memref<8x32xf32, #tpu.memory_space<vmem>>, vector<8x32xf32>
    %c0_1 = arith.constant 0 : index
    %c0_2 = arith.constant 0 : index
    %1 = vector.load %arg1[%c0_1, %c0_2] : memref<8x16xf32, #tpu.memory_space<vmem>>, vector<8x16xf32>
    %c0_3 = arith.constant 0 : index
    %c0_4 = arith.constant 0 : index
    %2 = vector.load %arg2[%c0_3, %c0_4] : memref<32x2xf32, #tpu.memory_space<vmem>>, vector<32x2xf32>
    %cst = arith.constant dense<0.000000e+00> : vector<8x2xf32>
    %3 = tpu.matmul %0, %2, %cst {dimension_numbers = #tpu.dot_dimension_numbers<[1], [0], [0], [1], [0, 0, 1, 1], [], []>} : vector<8x32xf32>, vector<32x2xf32>, vector<8x2xf32> -> vector<8x2xf32>
    %c0_5 = arith.constant 0 : index
    %c0_6 = arith.constant 0 : index
    %4 = vector.load %arg3[%c0_5, %c0_6] : memref<1x2xf32, #tpu.memory_space<vmem>>, vector<1x2xf32>
    %5 = vector.broadcast %4 : vector<1x2xf32> to vector<8x2xf32>
    %6 = arith.addf %3, %5 : vector<8x2xf32>
    %7 = arith.negf %6 : vector<8x2xf32>
    %8 = math.exp %7 : vector<8x2xf32>
    %cst_7 = arith.constant 1.000000e+00 : f32
    %9 = vector.broadcast %cst_7 : f32 to vector<8x2xf32>
    %10 = arith.addf %9, %8 : vector<8x2xf32>
    %11 = arith.divf %9, %10 : vector<8x2xf32>
    %c0_8 = arith.constant 0 : index
    %c0_9 = arith.constant 0 : index
    %12 = vector.load %arg4[%c0_8, %c0_9] : memref<16x32xf32, #tpu.memory_space<vmem>>, vector<16x32xf32>
    %cst_10 = arith.constant dense<0.000000e+00> : vector<8x32xf32>
    %13 = tpu.matmul %1, %12, %cst_10 {dimension_numbers = #tpu.dot_dimension_numbers<[1], [0], [0], [1], [0, 0, 1, 1], [], []>} : vector<8x16xf32>, vector<16x32xf32>, vector<8x32xf32> -> vector<8x32xf32>
    %c0_11 = arith.constant 0 : index
    %c0_12 = arith.constant 0 : index
    %14 = vector.load %arg5[%c0_11, %c0_12] : memref<1x32xf32, #tpu.memory_space<vmem>>, vector<1x32xf32>
    %15 = vector.broadcast %14 : vector<1x32xf32> to vector<8x32xf32>
    %16 = arith.addf %13, %15 : vector<8x32xf32>
    %17 = vector.extract_strided_slice %16 {offsets = [0, 0], sizes = [8, 16], strides = [1, 1]} : vector<8x32xf32> to vector<8x16xf32>
    %cst_13 = arith.constant dense<0xFF800000> : vector<8xf32>
    %18 = vector.multi_reduction <maximumf>, %17, %cst_13 [1] : vector<8x16xf32> to vector<8xf32>
    %19 = vector.shape_cast %18 : vector<8xf32> to vector<8x1xf32>
    %20 = vector.broadcast %19 : vector<8x1xf32> to vector<8x16xf32>
    %21 = arith.subf %17, %20 : vector<8x16xf32>
    %22 = math.exp %21 : vector<8x16xf32>
    %cst_14 = arith.constant dense<0.000000e+00> : vector<8xf32>
    %23 = vector.multi_reduction <add>, %22, %cst_14 [1] : vector<8x16xf32> to vector<8xf32>
    %24 = vector.shape_cast %23 : vector<8xf32> to vector<8x1xf32>
    %25 = tpu.reciprocal %24 : vector<8x1xf32> -> vector<8x1xf32>
    %26 = vector.broadcast %25 : vector<8x1xf32> to vector<8x16xf32>
    %27 = arith.mulf %22, %26 : vector<8x16xf32>
    %c0_15 = arith.constant 0 : index
    %c0_16 = arith.constant 0 : index
    %28 = vector.load %arg8[%c0_15, %c0_16] : memref<8x32xf32, #tpu.memory_space<vmem>>, vector<8x16xf32>
    tpu.vector_store %arg8[%c0_15, %c0_16], %27 {strides = array<i32>} : memref<8x32xf32, #tpu.memory_space<vmem>>, vector<8x16xf32>,
    %29 = arith.mulf %27, %1 : vector<8x16xf32>
    %c0_17 = arith.constant 0 : index
    %c0_18 = arith.constant 0 : index
    %30 = vector.load %arg7[%c0_17, %c0_18] : memref<8x32xf32, #tpu.memory_space<vmem>>, vector<8x16xf32>
    tpu.vector_store %arg7[%c0_17, %c0_18], %29 {strides = array<i32>} : memref<8x32xf32, #tpu.memory_space<vmem>>, vector<8x16xf32>,
    %31 = vector.extract_strided_slice %11 {offsets = [0, 0], sizes = [8, 1], strides = [1, 1]} : vector<8x2xf32> to vector<8x1xf32>
    %32 = vector.broadcast %31 : vector<8x1xf32> to vector<8x32xf32>
    %33 = arith.mulf %32, %0 : vector<8x32xf32>
    %c0_19 = arith.constant 0 : index
    %c0_20 = arith.constant 0 : index
    %34 = vector.load %arg6[%c0_19, %c0_20] : memref<8x64xf32, #tpu.memory_space<vmem>>, vector<8x32xf32>
    tpu.vector_store %arg6[%c0_19, %c0_20], %33 {strides = array<i32>} : memref<8x64xf32, #tpu.memory_space<vmem>>, vector<8x32xf32>,
    %35 = vector.extract_strided_slice %16 {offsets = [0, 16], sizes = [8, 16], strides = [1, 1]} : vector<8x32xf32> to vector<8x16xf32>
    %cst_21 = arith.constant dense<0xFF800000> : vector<8xf32>
    %36 = vector.multi_reduction <maximumf>, %35, %cst_21 [1] : vector<8x16xf32> to vector<8xf32>
    %37 = vector.shape_cast %36 : vector<8xf32> to vector<8x1xf32>
    %38 = vector.broadcast %37 : vector<8x1xf32> to vector<8x16xf32>
    %39 = arith.subf %35, %38 : vector<8x16xf32>
    %40 = math.exp %39 : vector<8x16xf32>
    %cst_22 = arith.constant dense<0.000000e+00> : vector<8xf32>
    %41 = vector.multi_reduction <add>, %40, %cst_22 [1] : vector<8x16xf32> to vector<8xf32>
    %42 = vector.shape_cast %41 : vector<8xf32> to vector<8x1xf32>
    %43 = tpu.reciprocal %42 : vector<8x1xf32> -> vector<8x1xf32>
    %44 = vector.broadcast %43 : vector<8x1xf32> to vector<8x16xf32>
    %45 = arith.mulf %40, %44 : vector<8x16xf32>
    %c0_23 = arith.constant 0 : index
    %c16 = arith.constant 16 : index
    %46 = vector.load %arg8[%c0_23, %c16] : memref<8x32xf32, #tpu.memory_space<vmem>>, vector<8x16xf32>
    tpu.vector_store %arg8[%c0_23, %c16], %45 {strides = array<i32>} : memref<8x32xf32, #tpu.memory_space<vmem>>, vector<8x16xf32>,
    %47 = arith.mulf %45, %1 : vector<8x16xf32>
    %c0_24 = arith.constant 0 : index
    %c16_25 = arith.constant 16 : index
    %48 = vector.load %arg7[%c0_24, %c16_25] : memref<8x32xf32, #tpu.memory_space<vmem>>, vector<8x16xf32>
    tpu.vector_store %arg7[%c0_24, %c16_25], %47 {strides = array<i32>} : memref<8x32xf32, #tpu.memory_space<vmem>>, vector<8x16xf32>,
    %49 = vector.extract_strided_slice %11 {offsets = [0, 1], sizes = [8, 1], strides = [1, 1]} : vector<8x2xf32> to vector<8x1xf32>
    %50 = vector.broadcast %49 : vector<8x1xf32> to vector<8x32xf32>
    %51 = arith.mulf %50, %0 : vector<8x32xf32>
    %c0_26 = arith.constant 0 : index
    %c32 = arith.constant 32 : index
    %52 = vector.load %arg6[%c0_26, %c32] : memref<8x64xf32, #tpu.memory_space<vmem>>, vector<8x32xf32>
    tpu.vector_store %arg6[%c0_26, %c32], %51 {strides = array<i32>} : memref<8x64xf32, #tpu.memory_space<vmem>>, vector<8x32xf32>,
    return
  }
}

</mosaic_0001>

<bundles_post_ra>
// kernel: tpu_custom_call.1
= control target key start
LH: loop header
LB: loop body
LE: loop exit
PB: predicated region body
PF: predicated region fallthrough
CT: control target
= control target key end

     0   :  { %14 = vsyncpa [#allocation3], 0  ;;  %v435_v2 = vmov 0.0|0.0   ;;  %vm436_vm0 = vmmov 0   ;;  %v437_v4 = vmov 0.0   ;;  %vm130_vm1 = vcmask 130048   ;;  %s573_s0 = inlined_call_operand.vmem [shape: f32[8,32], index: 0, kind: input, shape index: {}]   ;;  %s574_s1 = inlined_call_operand.vmem [shape: f32[8,16], index: 1, kind: input, shape index: {}]   ;;  %s575_s2 = inlined_call_operand.vmem [shape: f32[32,2], index: 2, kind: input, shape index: {}]   ;;  %s576_s3 = inlined_call_operand.vmem [shape: f32[1,2], index: 3, kind: input, shape index: {}]   ;;  %s577_s4 = inlined_call_operand.vmem [shape: f32[16,32], index: 4, kind: input, shape index: {}]   ;;  %s578_s5 = inlined_call_operand.vmem [shape: f32[1,32], index: 5, kind: input, shape index: {}]   ;;  %s579_s6 = inlined_call_operand.hbm [shape: f32[8,64], index: 6, kind: output, shape index: {0}]   ;;  %s580_s7 = inlined_call_operand.hbm [shape: f32[8,32], index: 7, kind: output, shape index: {1}]   ;;  %s581_s8 = inlined_call_operand.hbm [shape: f32[8,32], index: 8, kind: output, shape index: {2}]  }
   0x1   :  { %v121_v0 = vld [vmem:[%s577_s4] sm:$0xff]  ;;  %v122_v1 = vld [vmem:[%s577_s4 + $0x8] sm:$0xff]  ;;  %336 = vmatprep.subr.bf16.mxu1 %v435_v2  ;;  %327 = vmatprep.mubr.msk.f32.mxu1 %vm436_vm0, %v437_v4  ;;  %v32_v7 = vld [vmem:[%s575_s2 + $0x10] sm:$0xff] }
   0x2   :  { %v337_v3 = vpack.c.bf16 %v122_v1, %v121_v0  ;;  %v30_v5 = vld [vmem:[%s575_s2] sm:$0xff]  ;;  %v31_v6 = vld [vmem:[%s575_s2 + $0x8] sm:$0xff]  ;;  %330 = vmatprep.subr.bf16.mxu0 %v435_v2  ;;  %v33_v9 = vld [vmem:[%s575_s2 + $0x18] sm:$0xff]  ;;  %320 = vmatprep.mubr.msk.f32.mxu0 %vm436_vm0, %v437_v4 }
   0x3   :  { %v331_v8 = vpack.c.bf16 %v31_v6, %v30_v5  ;;  %v512_v10 = vld [vmem:[%s574_s1] sm:$0xff] }
   0x4   :  { %338 = vmatpush3.bf16.msra.mxu1 %v337_v3 }
   0x5   :  { %15 = vsyncpa [#allocation5], 0  ;;  %332 = vmatpush3.bf16.msra.mxu0 %v331_v8  ;;  %v334_v11 = vpack.c.bf16 %v33_v9, %v32_v7  ;;  %v28_v12 = vld [vmem:[%s573_s0] sm:$0xff]  ;;  %vm41_vm2 = vcmask 261120   ;;  %v438_v13 = vmov 0   ;;  %vm225_vm3 = vcmask 261248  }
   0x6   :  { %333 = vmatprep.subr.bf16.mxu0 %v435_v2  ;;  %351 = vset.pattern.permute.xlu0 %v438_v13  ;;  %v302_v14 = vld [vmem:[%s578_s5] ss:$0 sm:$0xff]  ;;  %v439_v28 = vmov 1   ;;  %s440_s0 = smov 112   ;;  %s442_s5 = smov 32   ;;  %vm256_vm4 = vcmask 523520  }
   0x7   :  { %328 = vmatmul.mubr.msk.f32.vlgmr.msra.gmra.mrb[0].mxu1 %vm130_vm1, %v512_v10  ;;  %v299_v19 = vld [vmem:[%s576_s3] ss:$0 sm:$0xff]  ;;  %350 = vset.pattern.permute.xlu1 %v439_v28  ;;  %s441_s3 = smov 16   ;;  %s443_s22 = smov [#allocation2]  }
   0x8   :  { %s264_s23 = sshll.u32 %s443_s22, 4  ;;  %s265_s23 = int_to_ptr.vmem [resolvable:$true] %s264_s23 }
   0x9   :  { %335 = vmatpush3.bf16.msra.mxu0 %v334_v11  ;;  %s365_s24 = scalar_lea.vmem %s265_s23, 128  ;;  %p370_p1 = scmp.lt.s32.totalorder %s265_s23, %s265_s23 }
   0xa   :  { %p366_p0 = scmp.ne.s32.totalorder %s265_s23, %s365_s24  ;;  %p371_p2 = scmp.lt.s32.totalorder %s365_s24, %s365_s24 }
   0xc   :  { %321 = vmatmul.mubr.msk.f32.vlgmr.msra.gmra.mrb[0].mxu0 %vm41_vm2, %v28_v12  ;;  %p372_p3 = por %p371_p2, %p370_p1 }
   0xe   :  { %p373_p4 = pnand %p372_p3, %p366_p0 }
  0xda   :  { %v200_v15 = vpop.f32.mrb[0].mxu1 }
  0xdb   :  { %v201_v16 = vadd.f32 %v302_v14, %v200_v15  ;;  %v329_v17 = vpop.f32.mrb[1].mxu1 }
  0xdd   :  { %v226_v18 = vsel %vm225_vm3, %v201_v16, -inf  ;;  %v204_v23 = vsel %vm130_vm1, %v201_v16, -inf }
  0xde   :  { %227 = vmax.xlane.f32.xlu0 %v226_v18 }
  0xdf   :  { %v111_v20 = vpop.f32.mrb[0].mxu0 }
  0xe0   :  { %v112_v21 = vadd.f32 %v299_v19, %v111_v20  ;;  %v322_v22 = vpop.f32.mrb[1].mxu0 }
  0xe2   :  { %205 = vmax.xlane.f32.xlu0 %v204_v23  ;;  %v301_v24 = vmul.f32 -1.442695, %v112_v21 }
  0xe4   :  { %353 = vpow2.f32 %v301_v24 }
  0xee   :  { %v354_v25 = vpop.eup %353 }
  0xef   :  { %v118_v26 = vadd.f32 1.0, %v354_v25 }
  0xf1   :  { %355 = vrcp.f32 %v118_v26 }
  0xfb   :  { %v356_v27 = vpop.eup %355 }
  0xfc   :  { %220 = vperm.xlu0 %351, %v356_v27  }
 0x100   :  { %352 = vset.pattern.permute.xlu0 %v439_v28 }
 0x16b   :  { %v228_v29 = vpop.xlane.xlu0 %227 }
 0x16c   :  { %v229_v30 = vsub.f32 %v201_v16, %v228_v29 }
 0x16e   :  { %v230_v31 = vmul.f32 1.442695, %v229_v30 }
 0x16f   :  { %v206_v32 = vpop.xlane.xlu0 %205 }
 0x170   :  { %357 = vpow2.f32 %v230_v31  ;;  %v207_v33 = vsub.f32 %v201_v16, %v206_v32 }
 0x172   :  { %v208_v34 = vmul.f32 1.442695, %v207_v33 }
 0x174   :  { %359 = vpow2.f32 %v208_v34 }
 0x17a   :  { %v358_v35 = vpop.eup %357 }
 0x17b   :  { %233 = vrot.lane.b32.xlu1 %v358_v35, %s440_s0  ;;  %v221_v36 = vpop.permute.xlu0 %220 }
 0x17c   :  { %v223_v37 = vmul.f32 %v221_v36, %v28_v12 }
 0x17e   :  { %v360_v38 = vpop.eup %359  ;;  %224 = vst.msk [vmem:[#allocation2] sm:$0xff] %vm41_vm2, %v223_v37 }
 0x17f   :  { %v210_v39 = vsel %vm130_vm1, %v360_v38, 0.0  ;;  %248 = vperm.xlu1 %350, %v356_v27  }
 0x180   :  { %211 = vadd.xlane.f32.xlu0 %v210_v39 }
 0x1ed   :  { %v234_v40 = vpop.permute.xlu1 %233 }
 0x1ee   :  { %v236_v41 = vsel %vm130_vm1, %v234_v40, 0.0 }
 0x1ef   :  { %237 = vadd.xlane.f32.xlu1 %v236_v41 }
 0x1fe   :  { %v249_v42 = vpop.permute.xlu1 %248 }
 0x1ff   :  { %v251_v43 = vmul.f32 %v249_v42, %v28_v12 }
 0x200   :  { %242 = vrot.lane.b32.xlu1 %v512_v10, %s441_s3 }
 0x201   :  { %253 = vrot.lane.b32.xlu0 %v251_v43, %s442_s5 }
 0x20d   :  { %v212_v44 = vpop.xlane.xlu0 %211 }
 0x20e   :  { %361 = vrcp.f32 %v212_v44 }
 0x218   :  { %v362_v45 = vpop.eup %361 }
 0x219   :  { %v214_v46 = vmul.f32 %v362_v45, %v360_v38 }
 0x21b   :  { %v216_v47 = vmul.f32 %v214_v46, %v512_v10  ;;  %215 = vst.msk [vmem:[#allocation6] sm:$0xff] %vm130_vm1, %v214_v46 }
 0x21d   :  { %217 = vst.msk [vmem:[#allocation4] sm:$0xff] %vm130_vm1, %v216_v47 }
 0x273   :  { %v254_v48 = vpop.permute.xlu0 %253 }
 0x274   :  { %257 = vst.msk [vmem:[#allocation2] sm:$0xff] %vm256_vm4, %v254_v48 }
 0x275   :  { %376 = shalt.err (!%p373_p4)
}
 0x276   :  { %s377_s27 = scalar_lea.hbm %s579_s6, 128 }
 0x277   :  { %p378_p5 = scmp.ne.s32.totalorder %s579_s6, %s377_s27  ;;  %p381_p6 = scmp.lt.u32.totalorder %s377_s27, %s579_s6 }
 0x279   :  { %p383_p7 = pnand %p381_p6, %p378_p5 }
 0x27b   :  { %386 = shalt.err (!%p383_p7)
}
 0x27c   :  { %267 = dma.vmem_to_hbm [thread:$0]  %s265_s23, 128, %s579_s6, [#allocation3]   ;;  %v238_v49 = vpop.xlane.xlu1 %237 }
 0x27d   :  { %363 = vrcp.f32 %v238_v49  ;;  %s444_s12 = smov [#allocation4]   ;;  %s445_s14 = smov [#allocation6]  }
 0x27e   :  { %s274_s13 = sshll.u32 %s444_s12, 4  ;;  %s284_s4 = sshll.u32 %s445_s14, 4  ;;  %s275_s13 = int_to_ptr.vmem [resolvable:$true] %s274_s13  ;;  %s285_s4 = int_to_ptr.vmem [resolvable:$true] %s284_s4 }
 0x27f   :  { %s387_s15 = scalar_lea.vmem %s275_s13, 128  ;;  %p392_p9 = scmp.lt.s32.totalorder %s275_s13, %s275_s13 }
 0x280   :  { %v243_v51 = vpop.permute.xlu1 %242  ;;  %p388_p8 = scmp.ne.s32.totalorder %s275_s13, %s387_s15  ;;  %p393_p10 = scmp.lt.s32.totalorder %s387_s15, %s387_s15 }
 0x282   :  { %p394_p11 = por %p393_p10, %p392_p9 }
 0x284   :  { %p395_p12 = pnand %p394_p11, %p388_p8 }
 0x287   :  { %v364_v50 = vpop.eup %363 }
 0x288   :  { %v240_v52 = vmul.f32 %v364_v50, %v358_v35 }
 0x28a   :  { %v245_v53 = vmul.f32 %v243_v51, %v240_v52  ;;  %241 = vst.msk [vmem:[#allocation6] sm:$0xff] %vm225_vm3, %v240_v52 }
 0x28c   :  { %246 = vst.msk [vmem:[#allocation4] sm:$0xff] %vm225_vm3, %v245_v53 }
 0x28d   :  { %398 = shalt.err (!%p395_p12)
}
 0x28e   :  { %s399_s17 = scalar_lea.hbm %s580_s7, 128 }
 0x28f   :  { %p400_p13 = scmp.ne.s32.totalorder %s580_s7, %s399_s17  ;;  %p403_p0 = scmp.lt.u32.totalorder %s399_s17, %s580_s7 }
 0x291   :  { %p405_p1 = pnand %p403_p0, %p400_p13 }
 0x293   :  { %408 = shalt.err (!%p405_p1)
}
 0x294   :  { %277 = dma.vmem_to_hbm [thread:$0]  %s275_s13, 128, %s580_s7, [#allocation5]  }
 0x295   :  { %s409_s0 = scalar_lea.vmem %s285_s4, 128  ;;  %p414_p3 = scmp.lt.s32.totalorder %s285_s4, %s285_s4 }
 0x296   :  { %p410_p2 = scmp.ne.s32.totalorder %s285_s4, %s409_s0  ;;  %p415_p4 = scmp.lt.s32.totalorder %s409_s0, %s409_s0 }
 0x298   :  { %p416_p5 = por %p415_p4, %p414_p3 }
 0x29a   :  { %p417_p6 = pnand %p416_p5, %p410_p2 }
 0x29c   :  { %420 = shalt.err (!%p417_p6)
}
 0x29d   :  { %s421_s22 = scalar_lea.hbm %s581_s8, 128 }
 0x29e   :  { %p422_p7 = scmp.ne.s32.totalorder %s581_s8, %s421_s22  ;;  %p425_p8 = scmp.lt.u32.totalorder %s421_s22, %s581_s8 }
 0x2a0   :  { %p427_p9 = pnand %p425_p8, %p422_p7 }
 0x2a2   :  { %430 = shalt.err (!%p427_p9)
}
 0x2a3   :  { %287 = dma.vmem_to_hbm [thread:$0]  %s285_s4, 128, %s581_s8, [#allocation5]  }
 0x2a4   :  { %431 = dma.done.wait [#allocation3], 128  }
 0x2a5   :  { %432 = vsyncadd [#allocation3], 4294967168 }
 0x2a6   :  { %433 = dma.done.wait [#allocation5], 256  }
 0x2a7   :  { %434 = vsyncadd [#allocation5], 4294967040 }
 0x2a8   :  { %297 = vsyncpa [#allocation3], 1 }
 0x2a9   :  { %298 = vsyncpa [#allocation5], 1 }

</bundles_post_ra>
